<compile_context>
chip_gen: v6e
topology: v6e:2x2x1
jax: 0.10.0
libtpu: 0.0.40
codegen_flags: <defaults>
</compile_context>

<pallas_src>
import jax
import jax.numpy as jnp
from jax import lax
from jax.experimental import pallas as pl
from jax.experimental.pallas import tpu as pltpu


# ----------------------------- glue (plain JAX) ------------------------------

def _round_up(a, m):
    return (a + m - 1) // m * m


def remove_self_loops(edge_index):
    # dense_knn_matrix puts the node itself as the first neighbor; drop it.
    return edge_index[:, :, :, 1:]


def batched_index_select(x, idx):
    # x: (B, C, N), idx: (B, N, K) -> out[b,c,n,k] = x[b,c,idx[b,n,k]]  (B,C,N,K)
    return jax.vmap(lambda xb, ib: xb[:, ib])(x, idx)


# ------------------------------- Pallas kernel --------------------------------

def mrconv_kernel(idx_ref, x_ref, wa_ref, wd_ref, bias_ref, o_ref, gmax_ref):
    # idx_ref : SMEM (B, K, N_pad) int32  neighbor indices (scalar prefetch)
    # x_ref   : VMEM (N_pad, C_pad) f32   node-major feature slab of batch b (resident)
    # wa_ref  : VMEM (C_pad, O_pad) bf16  (W_x - W_d)^T  -> acts on x
    # wd_ref  : VMEM (C_pad, O_pad) bf16  W_d^T          -> acts on max_k(x_j)
    # bias_ref: VMEM (1, O_pad)     f32   conv bias
    # o_ref   : VMEM (tile_n, O_pad) f32  output tile (node-major)
    # gmax_ref: VMEM (tile_n, C_pad) f32  scratch: max_k(x_j) for this tile
    bi = pl.program_id(0)
    tile_n = o_ref.shape[0]
    K = idx_ref.shape[1]
    n0 = pl.multiple_of(pl.program_id(1) * tile_n, 8)

    # ---- fused neighbor gather + K-max (no K-sized HBM stream) ---------------
    # x_i is the center feature (edge_index[1] is the broadcast arange), so
    # max_k(x_j - x_i) == max_k(x_j) - x; the "- x" is folded into wa_ref.
    def gather_one(n, carry):
        col = n0 + n
        acc = x_ref[pl.ds(idx_ref[bi, 0, col], 1), :]            # (1, C_pad)
        for k in range(1, K):                                    # K is small; unrolled
            acc = jnp.maximum(acc, x_ref[pl.ds(idx_ref[bi, k, col], 1), :])
        gmax_ref[pl.ds(n, 1), :] = acc
        return carry

    lax.fori_loop(0, tile_n, gather_one, 0)

    # ---- fused 1x1 conv + bias + ReLU (bf16 MXU, f32 accumulate) -------------
    x_tile = x_ref[pl.ds(n0, tile_n), :].astype(jnp.bfloat16)    # (tile_n, C_pad)
    g_tile = gmax_ref[...].astype(jnp.bfloat16)                  # (tile_n, C_pad)
    acc = jnp.dot(x_tile, wa_ref[...], preferred_element_type=jnp.float32)
    acc = acc + jnp.dot(g_tile, wd_ref[...], preferred_element_type=jnp.float32)
    acc = acc + bias_ref[...]                                    # (1,Op) broadcast
    o_ref[...] = jnp.maximum(acc, 0.0).astype(o_ref.dtype)       # ReLU


# ------------------------------- wrapper ---------------------------------------

def mrconv2d(x, edge_index, weight, bias, *, tile_n=512):
    """MRConv2d forward (GraphConv2d with conv='mr').

    x          : (B, C, N, 1) f32  NCHW dense vertex features (W = 1).
    edge_index : (2, B, N, K) int  dense KNN edges.  CONTRACT: edge_index[1] is
                 the broadcast center index and the self loop is the FIRST
                 neighbor column (dense_knn_matrix convention) — required for
                 remove_self_loops and the max_k(x_j - x_i) == max_k(x_j) - x fold.
    weight     : (O, 2C) f32  Conv2d(2C -> O, 1x1) weight (kernel dims squeezed);
                 columns [0, C) act on x, [C, 2C) on the max-relative feature.
    bias       : (O,) f32
    returns    : (B, O, N, 1) f32
    """
    edge_index = remove_self_loops(edge_index)
    B, C, N, _ = x.shape
    K = edge_index.shape[-1]
    if K < 1:
        raise ValueError("MRConv2d needs at least one neighbor after remove_self_loops")
    O = weight.shape[0]

    # Lane-dense channel / output padding (unmasked row gathers + vst), node dim
    # padded to a multiple of the tile on the sublane axis.
    C_pad = _round_up(C, 128)
    O_pad = _round_up(O, 128)
    tile_n = int(min(max(tile_n, 128), _round_up(N, 128)))
    tile_n = _round_up(tile_n, 128)

    # Generation-aware VMEM budget (v7x: 64 MiB physical, v5e/v6e: 128 MiB).
    try:
        vmem_cap = int(pltpu.get_tpu_info().vmem_capacity_bytes)
    except Exception:
        vmem_cap = 64 * 1024 * 1024
    budget = (vmem_cap * 3) // 4

    def vmem_estimate(tn):
        npad = _round_up(N, tn)
        return (2 * npad * C_pad * 4            # resident x slab (double-buffered)
                + 2 * tn * O_pad * 4            # output tile (double-buffered)
                + 2 * 2 * C_pad * O_pad * 2     # two bf16 weight matrices
                + tn * C_pad * 4                # gather/max scratch
                + 2 * 8 * O_pad * 4)            # bias

    while tile_n > 128 and vmem_estimate(tile_n) > budget:
        tile_n //= 2
    N_pad = _round_up(N, tile_n)
    vmem_limit = int(min(budget,
                         max(vmem_estimate(tile_n) * 3 // 2 + (2 << 20),
                             16 * 1024 * 1024)))

    # Node-major slab (B, N_pad, C_pad): rows = vertices, channels lane-dense.
    # Padded rows are zero and only reachable from padded nodes (sliced away).
    x_nodes = jnp.transpose(x[..., 0], (0, 2, 1)).astype(jnp.float32)
    x_nodes = jnp.pad(x_nodes, ((0, 0), (0, N_pad - N), (0, C_pad - C)))

    # Neighbor indices (B, K, N_pad) int32 -> SMEM scalar prefetch.
    # Padded node columns gather vertex 0; their outputs are discarded below.
    nn_idx = jnp.transpose(edge_index[0], (0, 2, 1)).astype(jnp.int32)
    nn_idx = jnp.pad(nn_idx, ((0, 0), (0, 0), (0, N_pad - N)))

    # Fold the "- x_i" of the max-relative feature into the x weights:
    #   W_x @ x + W_d @ (max_k x_j - x) == (W_x - W_d) @ x + W_d @ max_k x_j
    w_x = weight[:, :C].astype(jnp.float32)
    w_d = weight[:, C:].astype(jnp.float32)
    wa = jnp.zeros((C_pad, O_pad), jnp.float32).at[:C, :O].set((w_x - w_d).T)
    wd = jnp.zeros((C_pad, O_pad), jnp.float32).at[:C, :O].set(w_d.T)
    wa = wa.astype(jnp.bfloat16)
    wd = wd.astype(jnp.bfloat16)
    b_pad = jnp.zeros((1, O_pad), jnp.float32).at[0, :O].set(bias.astype(jnp.float32))

    grid = (B, N_pad // tile_n)

    out = pl.pallas_call(
        mrconv_kernel,
        out_shape=jax.ShapeDtypeStruct((B, N_pad, O_pad), jnp.float32),
        grid_spec=pltpu.PrefetchScalarGridSpec(
            num_scalar_prefetch=1,
            grid=grid,
            in_specs=[
                # per-batch resident x slab (constant across n -> fetched once per b)
                pl.BlockSpec((None, N_pad, C_pad), lambda b, n, idx: (b, 0, 0)),
                pl.BlockSpec((C_pad, O_pad), lambda b, n, idx: (0, 0)),
                pl.BlockSpec((C_pad, O_pad), lambda b, n, idx: (0, 0)),
                pl.BlockSpec((1, O_pad), lambda b, n, idx: (0, 0)),
            ],
            out_specs=pl.BlockSpec((None, tile_n, O_pad), lambda b, n, idx: (b, n, 0)),
            scratch_shapes=[pltpu.VMEM((tile_n, C_pad), jnp.float32)],
        ),
        compiler_params=pltpu.CompilerParams(
            dimension_semantics=("parallel", "parallel"),
            vmem_limit_bytes=vmem_limit,
        ),
    )(nn_idx, x_nodes, wa, wd, b_pad)

    out = out[:, :N, :O]                                   # drop padding
    return jnp.transpose(out, (0, 2, 1))[..., None]        # (B, O, N, 1)


# ------------------------------- reference -------------------------------------

def mrconv2d_ref(x, edge_index, weight, bias):
    # General (un-optimized, f32) MRConv2d semantics with explicit x_i gather.
    edge_index = remove_self_loops(edge_index)
    x3 = x[..., 0]
    x_i = batched_index_select(x3, edge_index[1])
    x_j = batched_index_select(x3, edge_index[0])
    dmax = jnp.max(x_j - x_i, axis=-1)                 # (B, C, N)
    feat = jnp.concatenate([x3, dmax], axis=1)         # (B, 2C, N)
    out = jnp.einsum("oc,bcn->bon", weight, feat) + bias[None, :, None]
    return jnp.maximum(out, 0.0)[..., None]


# ------------------------------- main -------------------------------------------

if __name__ == "__main__":
    B, C, N, K, O = 2, 4, 16, 8, 8

    key = jax.random.PRNGKey(0)
    kx, kw, kb, ki = jax.random.split(key, 4)

    x = jax.random.normal(kx, (B, C, N, 1), dtype=jnp.float32)

    # Conv2d(in=2C, out=O, kernel_size=1, bias=True) parameters (deterministic).
    weight = 0.1 * jax.random.normal(kw, (O, 2 * C), dtype=jnp.float32)
    bias = 0.1 * jax.random.normal(kb, (O,), dtype=jnp.float32)

    # Dense KNN-style edge_index (2, B, N, K): edge_index[0] = neighbor idx
    # (self first, like dense_knn_matrix), edge_index[1] = center idx.
    self_idx = jnp.broadcast_to(jnp.arange(N, dtype=jnp.int32)[None, :, None], (B, N, 1))
    rand_nn = jax.random.randint(ki, (B, N, K - 1), 0, N, dtype=jnp.int32)
    nn_idx = jnp.concatenate([self_idx, rand_nn], axis=-1)                        # (B, N, K)
    center_idx = jnp.broadcast_to(jnp.arange(N, dtype=jnp.int32)[None, :, None], (B, N, K))
    edge_index = jnp.stack([nn_idx, center_idx], axis=0)                          # (2, B, N, K)

    out = mrconv2d(x, edge_index, weight, bias)
    out = jax.block_until_ready(out)

    ref = mrconv2d_ref(x, edge_index, weight, bias)
    assert out.shape == (B, O, N, 1), out.shape
    # bf16 MXU inputs (f32 accumulation) -> tolerance loosened vs the f32 reference.
    err = float(jnp.max(jnp.abs(out - ref)))
    assert jnp.allclose(out, ref, atol=5e-2, rtol=5e-2), f"mismatch vs reference, max err {err}"

    print("KERNEL_OK")
</pallas_src>

<mosaic_0001>
module attributes {stable_mosaic.version = 11 : i64} {
  func.func @mrconv_kernel(%arg0: i32, %arg1: i32, %arg2: memref<2x7x128xi32, #tpu.memory_space<smem>>, %arg3: memref<1x128x128xf32, #tpu.memory_space<vmem>>, %arg4: memref<128x128xbf16, #tpu.memory_space<vmem>>, %arg5: memref<128x128xbf16, #tpu.memory_space<vmem>>, %arg6: memref<1x128xf32, #tpu.memory_space<vmem>>, %arg7: memref<1x128x128xf32, #tpu.memory_space<vmem>>, %arg8: memref<128x128xf32, #tpu.memory_space<vmem>>) attributes {dimension_semantics = [#tpu.dimension_semantics<parallel>, #tpu.dimension_semantics<parallel>], iteration_bounds = array<i64: 2, 1>, scalar_prefetch = 1 : i64, scratch_operands = 1 : i64, tpu.core_type = #tpu.core_type<tc>, window_params = [{transform_indices = @transform_0, window_bounds = array<i64: 1, 128, 128>}, {pipeline_mode = #tpu.pipeline_mode<synchronous>, transform_indices = @transform_1, window_bounds = array<i64: 128, 128>}, {pipeline_mode = #tpu.pipeline_mode<synchronous>, transform_indices = @transform_2, window_bounds = array<i64: 128, 128>}, {pipeline_mode = #tpu.pipeline_mode<synchronous>, transform_indices = @transform_3, window_bounds = array<i64: 1, 128>}, {transform_indices = @transform_4, window_bounds = array<i64: 1, 128, 128>}]} {
    %c128_i32 = arith.constant 128 : i32
    %0 = arith.muli %arg1, %c128_i32 : i32
    %1 = tpu.assume_multiple %0, 8 : i32
    %c0_i32 = arith.constant 0 : i32
    %c128_i32_0 = arith.constant 128 : i32
    %2 = arith.addi %c0_i32, %c128_i32_0 : i32
    %c1_i32 = arith.constant 1 : i32
    scf.for %arg9 = %c0_i32 to %2 step %c1_i32  : i32 {
      %22 = arith.addi %1, %arg9 : i32
      %23 = arith.index_cast %arg0 : i32 to index
      %c0_16 = arith.constant 0 : index
      %24 = arith.index_cast %22 : i32 to index
      %25 = memref.load %arg2[%23, %c0_16, %24] : memref<2x7x128xi32, #tpu.memory_space<smem>>
      %c0_17 = arith.constant 0 : index
      %26 = arith.index_cast %25 : i32 to index
      %c0_18 = arith.constant 0 : index
      %27 = vector.load %arg3[%c0_17, %26, %c0_18] : memref<1x128x128xf32, #tpu.memory_space<vmem>>, vector<1x1x128xf32>
      %28 = vector.shape_cast %27 : vector<1x1x128xf32> to vector<1x128xf32>
      %29 = arith.index_cast %arg0 : i32 to index
      %c1 = arith.constant 1 : index
      %30 = arith.index_cast %22 : i32 to index
      %31 = memref.load %arg2[%29, %c1, %30] : memref<2x7x128xi32, #tpu.memory_space<smem>>
      %c0_19 = arith.constant 0 : index
      %32 = arith.index_cast %31 : i32 to index
      %c0_20 = arith.constant 0 : index
      %33 = vector.load %arg3[%c0_19, %32, %c0_20] : memref<1x128x128xf32, #tpu.memory_space<vmem>>, vector<1x1x128xf32>
      %34 = vector.shape_cast %33 : vector<1x1x128xf32> to vector<1x128xf32>
      %35 = arith.maximumf %28, %34 : vector<1x128xf32>
      %36 = arith.index_cast %arg0 : i32 to index
      %c2 = arith.constant 2 : index
      %37 = arith.index_cast %22 : i32 to index
      %38 = memref.load %arg2[%36, %c2, %37] : memref<2x7x128xi32, #tpu.memory_space<smem>>
      %c0_21 = arith.constant 0 : index
      %39 = arith.index_cast %38 : i32 to index
      %c0_22 = arith.constant 0 : index
      %40 = vector.load %arg3[%c0_21, %39, %c0_22] : memref<1x128x128xf32, #tpu.memory_space<vmem>>, vector<1x1x128xf32>
      %41 = vector.shape_cast %40 : vector<1x1x128xf32> to vector<1x128xf32>
      %42 = arith.maximumf %35, %41 : vector<1x128xf32>
      %43 = arith.index_cast %arg0 : i32 to index
      %c3 = arith.constant 3 : index
      %44 = arith.index_cast %22 : i32 to index
      %45 = memref.load %arg2[%43, %c3, %44] : memref<2x7x128xi32, #tpu.memory_space<smem>>
      %c0_23 = arith.constant 0 : index
      %46 = arith.index_cast %45 : i32 to index
      %c0_24 = arith.constant 0 : index
      %47 = vector.load %arg3[%c0_23, %46, %c0_24] : memref<1x128x128xf32, #tpu.memory_space<vmem>>, vector<1x1x128xf32>
      %48 = vector.shape_cast %47 : vector<1x1x128xf32> to vector<1x128xf32>
      %49 = arith.maximumf %42, %48 : vector<1x128xf32>
      %50 = arith.index_cast %arg0 : i32 to index
      %c4 = arith.constant 4 : index
      %51 = arith.index_cast %22 : i32 to index
      %52 = memref.load %arg2[%50, %c4, %51] : memref<2x7x128xi32, #tpu.memory_space<smem>>
      %c0_25 = arith.constant 0 : index
      %53 = arith.index_cast %52 : i32 to index
      %c0_26 = arith.constant 0 : index
      %54 = vector.load %arg3[%c0_25, %53, %c0_26] : memref<1x128x128xf32, #tpu.memory_space<vmem>>, vector<1x1x128xf32>
      %55 = vector.shape_cast %54 : vector<1x1x128xf32> to vector<1x128xf32>
      %56 = arith.maximumf %49, %55 : vector<1x128xf32>
      %57 = arith.index_cast %arg0 : i32 to index
      %c5 = arith.constant 5 : index
      %58 = arith.index_cast %22 : i32 to index
      %59 = memref.load %arg2[%57, %c5, %58] : memref<2x7x128xi32, #tpu.memory_space<smem>>
      %c0_27 = arith.constant 0 : index
      %60 = arith.index_cast %59 : i32 to index
      %c0_28 = arith.constant 0 : index
      %61 = vector.load %arg3[%c0_27, %60, %c0_28] : memref<1x128x128xf32, #tpu.memory_space<vmem>>, vector<1x1x128xf32>
      %62 = vector.shape_cast %61 : vector<1x1x128xf32> to vector<1x128xf32>
      %63 = arith.maximumf %56, %62 : vector<1x128xf32>
      %64 = arith.index_cast %arg0 : i32 to index
      %c6 = arith.constant 6 : index
      %65 = arith.index_cast %22 : i32 to index
      %66 = memref.load %arg2[%64, %c6, %65] : memref<2x7x128xi32, #tpu.memory_space<smem>>
      %c0_29 = arith.constant 0 : index
      %67 = arith.index_cast %66 : i32 to index
      %c0_30 = arith.constant 0 : index
      %68 = vector.load %arg3[%c0_29, %67, %c0_30] : memref<1x128x128xf32, #tpu.memory_space<vmem>>, vector<1x1x128xf32>
      %69 = vector.shape_cast %68 : vector<1x1x128xf32> to vector<1x128xf32>
      %70 = arith.maximumf %63, %69 : vector<1x128xf32>
      %71 = arith.index_cast %arg9 : i32 to index
      %c0_31 = arith.constant 0 : index
      %72 = vector.load %arg8[%71, %c0_31] : memref<128x128xf32, #tpu.memory_space<vmem>>, vector<1x128xf32>
      tpu.vector_store %arg8[%71, %c0_31], %70 {strides = array<i32>} : memref<128x128xf32, #tpu.memory_space<vmem>>, vector<1x128xf32>,
    }
    %c128_i32_1 = arith.constant 128 : i32
    %c0 = arith.constant 0 : index
    %3 = arith.index_cast %1 : i32 to index
    %c0_2 = arith.constant 0 : index
    %4 = vector.load %arg3[%c0, %3, %c0_2] : memref<1x128x128xf32, #tpu.memory_space<vmem>>, vector<1x128x128xf32>
    %5 = vector.shape_cast %4 : vector<1x128x128xf32> to vector<128x128xf32>
    %6 = arith.truncf %5 : vector<128x128xf32> to vector<128x128xbf16>
    %c0_3 = arith.constant 0 : index
    %c0_4 = arith.constant 0 : index
    %7 = vector.load %arg8[%c0_3, %c0_4] : memref<128x128xf32, #tpu.memory_space<vmem>>, vector<128x128xf32>
    %8 = arith.truncf %7 : vector<128x128xf32> to vector<128x128xbf16>
    %c0_5 = arith.constant 0 : index
    %c0_6 = arith.constant 0 : index
    %9 = vector.load %arg4[%c0_5, %c0_6] : memref<128x128xbf16, #tpu.memory_space<vmem>>, vector<128x128xbf16>
    %cst = arith.constant dense<0.000000e+00> : vector<128x128xf32>
    %10 = tpu.matmul %6, %9, %cst {dimension_numbers = #tpu.dot_dimension_numbers<[1], [0], [0], [1], [0, 0, 1, 1], [], []>} : vector<128x128xbf16>, vector<128x128xbf16>, vector<128x128xf32> -> vector<128x128xf32>
    %c0_7 = arith.constant 0 : index
    %c0_8 = arith.constant 0 : index
    %11 = vector.load %arg5[%c0_7, %c0_8] : memref<128x128xbf16, #tpu.memory_space<vmem>>, vector<128x128xbf16>
    %cst_9 = arith.constant dense<0.000000e+00> : vector<128x128xf32>
    %12 = tpu.matmul %8, %11, %cst_9 {dimension_numbers = #tpu.dot_dimension_numbers<[1], [0], [0], [1], [0, 0, 1, 1], [], []>} : vector<128x128xbf16>, vector<128x128xbf16>, vector<128x128xf32> -> vector<128x128xf32>
    %13 = arith.addf %10, %12 : vector<128x128xf32>
    %c0_10 = arith.constant 0 : index
    %c0_11 = arith.constant 0 : index
    %14 = vector.load %arg6[%c0_10, %c0_11] : memref<1x128xf32, #tpu.memory_space<vmem>>, vector<1x128xf32>
    %15 = vector.broadcast %14 : vector<1x128xf32> to vector<128x128xf32>
    %16 = arith.addf %13, %15 : vector<128x128xf32>
    %cst_12 = arith.constant 0.000000e+00 : f32
    %17 = vector.broadcast %cst_12 : f32 to vector<128x128xf32>
    %18 = arith.maximumf %16, %17 : vector<128x128xf32>
    %c0_13 = arith.constant 0 : index
    %c0_14 = arith.constant 0 : index
    %c0_15 = arith.constant 0 : index
    %19 = vector.load %arg7[%c0_13, %c0_14, %c0_15] : memref<1x128x128xf32, #tpu.memory_space<vmem>>, vector<1x128x128xf32>
    %20 = vector.shape_cast %19 : vector<1x128x128xf32> to vector<128x128xf32>
    %21 = vector.shape_cast %18 : vector<128x128xf32> to vector<1x128x128xf32>
    tpu.vector_store %arg7[%c0_13, %c0_14, %c0_15], %21 {strides = array<i32>} : memref<1x128x128xf32, #tpu.memory_space<vmem>>, vector<1x128x128xf32>,
    return
  }
  func.func @transform_0(%arg0: i32, %arg1: i32, %arg2: memref<2x7x128xi32, #tpu.memory_space<smem>>) -> (i32, i32, i32) {
    %c0_i32 = arith.constant 0 : i32
    %c0_i32_0 = arith.constant 0 : i32
    %c0_i32_1 = arith.constant 0 : i32
    return %arg0, %c0_i32, %c0_i32_0 : i32, i32, i32
  }
  func.func @transform_1(%arg0: i32, %arg1: i32, %arg2: memref<2x7x128xi32, #tpu.memory_space<smem>>) -> (i32, i32) {
    %c0_i32 = arith.constant 0 : i32
    %c0_i32_0 = arith.constant 0 : i32
    %c0_i32_1 = arith.constant 0 : i32
    return %c0_i32, %c0_i32_0 : i32, i32
  }
  func.func @transform_2(%arg0: i32, %arg1: i32, %arg2: memref<2x7x128xi32, #tpu.memory_space<smem>>) -> (i32, i32) {
    %c0_i32 = arith.constant 0 : i32
    %c0_i32_0 = arith.constant 0 : i32
    %c0_i32_1 = arith.constant 0 : i32
    return %c0_i32, %c0_i32_0 : i32, i32
  }
  func.func @transform_3(%arg0: i32, %arg1: i32, %arg2: memref<2x7x128xi32, #tpu.memory_space<smem>>) -> (i32, i32) {
    %c0_i32 = arith.constant 0 : i32
    %c0_i32_0 = arith.constant 0 : i32
    %c0_i32_1 = arith.constant 0 : i32
    return %c0_i32, %c0_i32_0 : i32, i32
  }
  func.func @transform_4(%arg0: i32, %arg1: i32, %arg2: memref<2x7x128xi32, #tpu.memory_space<smem>>) -> (i32, i32, i32) {
    %c0_i32 = arith.constant 0 : i32
    %c0_i32_0 = arith.constant 0 : i32
    return %arg0, %arg1, %c0_i32 : i32, i32, i32
  }
}

</mosaic_0001>

<bundles_post_ra>
// kernel: tpu_custom_call.1
= control target key start
LH: loop header
LB: loop body
LE: loop exit
PB: predicated region body
PF: predicated region fallthrough
CT: control target
= control target key end

     0   :  { %s1677_s0 = inlined_call_operand.vmem [shape: s32[2,7,128], index: 0, kind: input, shape index: {}]   ;;  %s1678_s1 = inlined_call_operand.hbm [shape: f32[2,128,128], index: 1, kind: input, shape index: {}]   ;;  %s1679_s2 = inlined_call_operand.hbm [shape: bf16[128,128], index: 2, kind: input, shape index: {}]   ;;  %s1680_s3 = inlined_call_operand.hbm [shape: bf16[128,128], index: 3, kind: input, shape index: {}]   ;;  %s1681_s4 = inlined_call_operand.vmem [shape: f32[1,128], index: 4, kind: input, shape index: {}]   ;;  %s1682_s5 = inlined_call_operand.hbm [shape: f32[2,128,128], index: 5, kind: output, shape index: {}]  }
   0x1   :  { %1690 = sst [smem:[#allocation21_spill]] %s1678_s1  ;;  %s10_s20 = sshll.u32 %s1677_s0, 4  ;;  %s11_s20 = int_to_ptr.vmem [resolvable:$true] %s10_s20 }
   0x2   :  { %1691 = sst [smem:[#allocation22_spill]] %s1679_s2  ;;  %s1153_s21 = scalar_lea.vmem %s11_s20, 256 }
   0x3   :  { %1692 = sst [smem:[#allocation23_spill]] %s1680_s3  ;;  %p1154_p0 = scmp.ne.s32.totalorder %s11_s20, %s1153_s21 }
   0x4   :  { %p1158_p1 = scmp.lt.s32.totalorder %s11_s20, %s11_s20  ;;  %p1159_p2 = scmp.lt.s32.totalorder %s1153_s21, %s1153_s21 }
   0x6   :  { %p1160_p3 = por %p1159_p2, %p1158_p1 }
   0x8   :  { %p1161_p4 = pnand %p1160_p3, %p1154_p0 }
   0xa   :  { %1164 = shalt.err (!%p1161_p4)  }
   0xb   :  { %s1341_s22 = smov [#allocation4]  }
   0xc   :  { %13 = dma.vmem_to_smem %s11_s20, 256, %s1341_s22, [#allocation3] }
   0xd   :  { %1299 = dma.done.wait [#allocation3], 256 }
   0xe   :  { %1300 = vsyncadd [#allocation3], 4294967040 }
   0xf   :  { %15 = sfence }
  0x10   :  { %16 = vsyncpa [#allocation6], 0 }
  0x11   :  { %18 = vsyncpa [#allocation6 + $0x1], 0 }
  0x12   :  { %19 = vsyncpa [#allocation9], 0 }
  0x13   :  { %20 = vsyncpa [#allocation7], 0 }
  0x14   :  { %22 = vsyncpa [#allocation7 + $0x1], 0  ;;  %s1385_s23 = smov 0   ;;  %s1387_s0 = smov 0  }
  0x15   :  { %s1389_s24 = smov 0   ;;  %s1391_s25 = smov 0  }
  0x16   :  { %s1393_s26 = smov 0   ;;  %s1395_s27 = smov 0  }
  0x17 LB: > { %1693 = sst [smem:[#allocation16_spill]] %s1319_s0  ;;  %s897_s28 = sadd.s32 4294967295, %s1335_s27   ;;  %s1335_s27 = sphi %s1395_s27, %s28_s27   ;;  %s1331_s26 = sphi %s1393_s26, %s1717_s26   ;;  %s1327_s25 = sphi %s1391_s25, %s1716_s25   ;;  %s1323_s24 = sphi %s1389_s24, %s1715_s24   ;;  %s1319_s0 = sphi %s1387_s0, %s1714_s0   ;;  %s1315_s23 = sphi %s1385_s23, %s1713_s23  }
  0x18   : > { %1694 = sst [smem:[#allocation17_spill]] %s1323_s24  ;;  %s898_s29 = sadd.s32 4294967294, %s1335_s27  }
  0x19   : > { %1695 = sst [smem:[#allocation18_spill]] %s1331_s26  ;;  %p60_p5 = scmp.ne.s32.totalorder %s1319_s0, %s1315_s23 }
  0x1a   : > { %p1419_p6 = scmp.eq.s32.totalorder %s897_s28, 0  ;;  %p1423_p7 = scmp.eq.s32.totalorder %s897_s28, 1 }
  0x1b   : > { %p155_p8 = scmp.eq.s32.totalorder %s898_s29, 1  ;;  %p899_p10 = scmp.ge.s32.totalorder %s1335_s27, 1 }
  0x1c   : > { %s1696_s30 = scalar_select %p1419_p6, 1, 0 }
  0x1d   : > { %p1429_p9 = por %p1419_p6, %p60_p5  ;;  %p1434_p11 = por %p155_p8, %p60_p5 }
  0x1e   : > { %p162_p12 = scmp.lt.s32.totalorder %s1335_s27, 3  ;;  %s1342_s10 = smov [#allocation8]  }
  0x1f   : > { %s1698_s7 = scalar_select %p1429_p9, 1, 0 }
  0x20   : > { %s1699_s8 = scalar_select %p1434_p11, 1, 0 }
  0x21   : > { %p1439_p13 = pnand %p899_p10, %p162_p12  ;;  %s174_s11 = sshll.u32 %s1342_s10, 4  ;;  %s175_s11 = int_to_ptr.vmem [resolvable:$true] %s174_s11 }
  0x22   : > { %s1343_s13 = smov [#allocation10]   ;;  %s1176_s15 = scalar_lea.vmem %s175_s11, 1024 }
  0x23   : > { %p1051_p0 = pneg %p1439_p13  ;;  %s187_s14 = sshll.u32 %s1343_s13, 4  ;;  %s188_s14 = int_to_ptr.vmem [resolvable:$true] %s187_s14 }
  0x24   : > { %p1177_p4 = scmp.ne.s32.totalorder %s175_s11, %s1176_s15  ;;  %p1184_p10 = scmp.lt.s32.totalorder %s175_s11, %s175_s11 }
  0x25   : > { %p1448_p2 = pnand %p1051_p0, %p1419_p6  ;;  %p1185_p12 = scmp.lt.s32.totalorder %s1176_s15, %s1176_s15 }
  0x27   : > { %p1167_p3 = pneg %p1448_p2  ;;  %p1186_p1 = por %p1185_p12, %p1184_p10 }
  0x29   : > { %p1179_p5 = pnand %p1177_p4, %p1167_p3 }
  0x2b   : > { %p1180_p8 = pneg %p1179_p5 }
  0x2d   : > { %p1187_p0 = pnand %p1186_p1, %p1180_p8 }
  0x2f   : > { %1190 = shalt.err (!%p1187_p0)
}
  0x30   : > { %s1344_s16 = smov 64   ;;  %s1345_s17 = smov 4  }
  0x31   : > { %s1702_s2 = sld [smem:[#allocation22_spill]]  ;;  %s1202_s20 = scalar_lea.vmem %s188_s14, 1024 }
  0x32   : > { %p1203_p11 = scmp.ne.s32.totalorder %s188_s14, %s1202_s20  ;;  %p1210_p6 = scmp.lt.s32.totalorder %s188_s14, %s188_s14 }
  0x33   : > { %p1211_p9 = scmp.lt.s32.totalorder %s1202_s20, %s1202_s20 }
  0x34   : > { %p1205_p4 = pnand %p1203_p11, %p1167_p3 }
  0x35   : > { %p1212_p10 = por %p1211_p9, %p1210_p6 }
  0x36   : > { %p1206_p5 = pneg %p1205_p4 }
  0x37   : > { %1054 = dma.hbm_to_vmem [thread:$0]  (!%p1448_p2), %s1702_s2, 1024, %s175_s11, [#allocation9], %s1344_s16, %s1344_s16, %s1345_s17  }
  0x38   : > { %p1213_p1 = pnand %p1212_p10, %p1206_p5 }
  0x3a   : > { %1216 = shalt.err (!%p1213_p1)
}
  0x3b   : > { %s1703_s3 = sld [smem:[#allocation23_spill]]  ;;  %s40_s28 = sadd.s32 1, %s1331_s26 }
  0x3c   : > { %s47_s29 = sadd.s32 1, %s1323_s24  ;;  %p42_p6 = scmp.ge.s32.totalorder %s40_s28, 2 }
  0x3d   : > { %p54_p9 = scmp.ne.s32.totalorder %s1323_s24, %s1319_s0  ;;  %p55_p11 = scmp.eq.s32.totalorder %s1335_s27, 0 }
  0x3e   : > { %p1068_p3 = scmp.lt.s32.totalorder %s1335_s27, 2  ;;  %s1719_s28 = smov (%p42_p6, %s40_s28), 0 }
  0x3f   : > { %1704 = sst [smem:[#allocation19_spill]] %s1719_s28  ;;  %p56_p8 = por %p55_p11, %p54_p9 }
  0x40   : > { %p1480_p12 = por %p1423_p7, %p54_p9  ;;  %s44_s11 = ssub.s32 %s1331_s26, %s1719_s28 }
  0x41   : > { %1057 = dma.hbm_to_vmem [thread:$0]  (!%p1448_p2), %s1703_s3, 1024, %s188_s14, [#allocation9], %s1344_s16, %s1344_s16, %s1345_s17  }
  0x42   : > { %s204_s12 = sand.u32 1, %s1323_s24   ;;  %p45_p0 = scmp.eq.s32.totalorder %s44_s11, 0 }
  0x43   : > { %s903_s13 = sshll.u32 %s204_s12, 7  ;;  %s941_s14 = sshll.u32 %s1331_s26, 11 }
  0x44   : > { %s1489_s15 = scalar_select %p45_p0, %s1323_s24, %s47_s29  }
  0x45   : > { %s1707_s1 = sld [smem:[#allocation21_spill]]  ;;  %s208_s19 = scalar_lea.vmem [#allocation5], %s903_s13 }
  0x46   : > { %1706 = sst [smem:[#allocation20_spill]] %s1489_s15  ;;  %s215_s20 = sshll.u32 %s208_s19, 4  ;;  %s216_s20 = int_to_ptr.vmem [resolvable:$true] %s215_s20 }
  0x47   : > { %p1496_p2 = pnand %p1068_p3, %p56_p8  ;;  %s205_s21 = scalar_lea.sflag [#allocation6], %s204_s12 }
  0x48   : > { %s1230_s22 = scalar_lea.vmem %s216_s20, 2048  ;;  %s1346_s29 = smov [#allocation5]  }
  0x49   : > { %p1219_p7 = pneg %p1496_p2  ;;  %p1231_p4 = scmp.ne.s32.totalorder %s216_s20, %s1230_s22 }
  0x4a   : > { %s1235_s11 = sshll.u32 %s1346_s29, 4  ;;  %s1236_s11 = int_to_ptr.vmem [resolvable:$false] %s1235_s11 }
  0x4b   : > { %s214_s18 = scalar_lea.hbm %s1707_s1, %s941_s14  ;;  %p1233_p5 = pnand %p1231_p4, %p1219_p7 }
  0x4c   : > { %s1237_s14 = scalar_lea.vmem %s1236_s11, 4096  ;;  %p1238_p1 = scmp.lt.s32.totalorder %s216_s20, %s1236_s11 }
  0x4d   : > { %p1234_p10 = pneg %p1233_p5  ;;  %p1239_p6 = scmp.lt.s32.totalorder %s1237_s14, %s1230_s22 }
  0x4f   : > { %p1240_p9 = por %p1239_p6, %p1238_p1 }
  0x51   : > { %p1241_p11 = pnand %p1240_p9, %p1234_p10 }
  0x53   : > { %1244 = shalt.err (!%p1241_p11)
}
  0x54   : > { %s1347_s13 = smov 128   ;;  %s1348_s16 = smov 8  }
  0x55   : > { %1061 = dma.hbm_to_vmem [thread:$0]  (!%p1496_p2), %s214_s18, 2048, %s216_s20, %s205_s21, %s1347_s13, %s1347_s13, %s1348_s16  }
  0x56   : > { %227 = sbr.rel (%p1439_p13) target bundleno = 394 (0x18a), region = 36  ;;  %s1507_s12 = sand.u32 (!%p1439_p13), 1, %s1319_s0  }
  0x57   : > { %s907_s17 = sshll.u32 (!%p1439_p13), %s1507_s12, 7  ;;  %s230_s19 = scalar_lea.sflag (!%p1439_p13), [#allocation6], %s1507_s12 }
  0x58   : > { %s1511_s22 = scalar_lea.vmem (!%p1439_p13), [#allocation5], %s907_s17  ;;  %p1709_p3 = scmp.ne.s32.totalorder (!%p1439_p13), %s1698_s7, 0 }
  0x5b   : > { %1302 = dma.done.wait (%p1709_p3), %s230_s19, 2048  }
  0x5c   : > { %1304 = vsyncadd (%p1709_p3), %s230_s19, 4294965248  ;;  %p1710_p8 = scmp.ne.s32.totalorder %s1696_s30, 0 }
  0x5e   : > { %1306 = dma.done.wait (%p1710_p8), [#allocation9], 2048  }
  0x5f   : > { %1308 = vsyncadd (%p1710_p8), [#allocation9], 4294965248  ;;  %s1521_s9 = scalar_lea.vmem [#allocation11], %s907_s17  ;;  %s1523_s18 = smov 0  }
  0x60 LB: >> { %s1529_s7 = sshll.u32 %s1327_s25, 3  ;;  %s1532_s30 = sshra.s32 %s1339_s18, 7  ;;  %s1339_s18 = sphi %s1523_s18, %s274_s18  }
  0x61   : >> { %s1535_s20 = sand.u32 127, %s1339_s18  ;;  %s279_s6 = sadd.s32 %s1529_s7, %s1532_s30 }
  0x62   : >> { %s287_s21 = sadd.s32 1, %s1532_s30  ;;  %s912_s29 = sshll.u32 %s279_s6, 7 }
  0x63   : >> { %s288_s11 = sadd.s32 %s1529_s7, %s287_s21  ;;  %s283_s14 = sadd.s32 %s912_s29, %s1535_s20 }
  0x64   : >> { %s913_s13 = sshll.u32 %s288_s11, 7  ;;  %s284_s16 = sld [smem:[#allocation4 + %s283_s14]] }
  0x65   : >> { %s290_s17 = sadd.s32 %s913_s13, %s1535_s20  ;;  %s295_s1 = sadd.s32 2, %s1532_s30 }
  0x66   : >> { %s291_s19 = sld [smem:[#allocation4 + %s290_s17]]  ;;  %s296_s2 = sadd.s32 %s1529_s7, %s295_s1 }
  0x67   : >> { %s303_s3 = sadd.s32 3, %s1532_s30  ;;  %s914_s28 = sshll.u32 %s296_s2, 7 }
  0x68   : >> { %s304_s26 = sadd.s32 %s1529_s7, %s303_s3  ;;  %s298_s15 = sadd.s32 %s914_s28, %s1535_s20 }
  0x69   : >> { %s915_s6 = sshll.u32 %s304_s26, 7  ;;  %s299_s21 = sld [smem:[#allocation4 + %s298_s15]] }
  0x6a   : >> { %s306_s29 = sadd.s32 %s915_s6, %s1535_s20  ;;  %s285_s11 = scalar_lea.vmem %s1511_s22, %s284_s16 [#allocation5] }
  0x6b   : >> { %s307_s14 = sld [smem:[#allocation4 + %s306_s29]]  ;;  %v286_v0 = vld [vmem:[%s285_s11] sm:$0x1]  ;;  %s311_s17 = sadd.s32 4, %s1532_s30 }
  0x6c   : >> { %s292_s13 = scalar_lea.vmem %s1511_s22, %s291_s19 [#allocation5]  ;;  %s312_s1 = sadd.s32 %s1529_s7, %s311_s17 }
  0x6d   : >> { %v293_v1 = vld [vmem:[%s292_s13] sm:$0x1]  ;;  %s319_s2 = sadd.s32 5, %s1532_s30  ;;  %s916_s3 = sshll.u32 %s312_s1, 7 }
  0x6e   : >> { %v294_v2 = vmax.f32 %v286_v0, %v293_v1  ;;  %s320_s28 = sadd.s32 %s1529_s7, %s319_s2  ;;  %s314_s26 = sadd.s32 %s916_s3, %s1535_s20 }
  0x6f   : >> { %s917_s15 = sshll.u32 %s320_s28, 7  ;;  %s300_s6 = scalar_lea.vmem %s1511_s22, %s299_s21 [#allocation5] }
  0x70   : >> { %s315_s16 = sld [smem:[#allocation4 + %s314_s26]]  ;;  %v301_v3 = vld [vmem:[%s300_s6] sm:$0x1]  ;;  %s322_s11 = sadd.s32 %s917_s15, %s1535_s20 }
  0x71   : >> { %s308_s29 = scalar_lea.vmem %s1511_s22, %s307_s14 [#allocation5]  ;;  %v302_v4 = vmax.f32 %v294_v2, %v301_v3  ;;  %s323_s19 = sld [smem:[#allocation4 + %s322_s11]] }
  0x72   : >> { %v309_v5 = vld [vmem:[%s308_s29] sm:$0x1]  ;;  %s327_s13 = sadd.s32 6, %s1532_s30  ;;  %s335_s14 = scalar_lea.vmem [#allocation2], %s1339_s18 }
  0x73   : >> { %s328_s17 = sadd.s32 %s1529_s7, %s327_s13  ;;  %v310_v6 = vmax.f32 %v302_v4, %v309_v5  ;;  %s274_s18 = sadd.s32 1, %s1339_s18  }
  0x74   : >> { %s918_s1 = sshll.u32 %s328_s17, 7  ;;  %p271_p13 = scmp.ge.s32.totalorder %s274_s18, 128  }
  0x75   : >> { %s330_s24 = sadd.s32 %s918_s1, %s1535_s20  ;;  %v1137_v13 = vld [vmem:[#allocation10 + $0x38] sm:$0xff] (%p271_p13)   ;;  %v1139_v15 = vld [vmem:[#allocation10 + $0x30] sm:$0xff] (%p271_p13)   ;;  %v1141_v17 = vld [vmem:[#allocation10 + $0x28] sm:$0xff] (%p271_p13)   ;;  %s779_s18 = sshll.u32 (%p271_p13), %s1521_s9, 4  ;;  %s1627_s18 = int_to_ptr.vmem [resolvable:$true] %s779_s18 }
  0x76   : >> { %s316_s2 = scalar_lea.vmem %s1511_s22, %s315_s16 [#allocation5]  ;;  %s331_s0 = sld [smem:[#allocation4 + %s330_s24]]  ;;  %v1138_v14 = vld [vmem:[#allocation8 + $0x38] sm:$0xff] (%p271_p13)   ;;  %975 = vmatprep.subr.bf16.mxu0 (%p271_p13), %v1137_v13  ;;  %v1140_v16 = vld [vmem:[#allocation8 + $0x30] sm:$0xff] (%p271_p13)   ;;  %v1142_v18 = vld [vmem:[#allocation8 + $0x28] sm:$0xff] (%p271_p13)  }
  0x77   : >> { %v317_v7 = vld [vmem:[%s316_s2] sm:$0x1]  ;;  %s324_s21 = scalar_lea.vmem %s1511_s22, %s323_s19 [#allocation5]  ;;  %1007 = vmatprep.subr.bf16.mxu1 (%p271_p13), %v1138_v14  ;;  %976 = vmatpush3.bf16.msra.mxu0 (%p271_p13), %v1137_v13  ;;  %v1145_v21 = vld [vmem:[#allocation10 + $0x18] sm:$0xff] (%p271_p13)   ;;  %v1147_v23 = vld [vmem:[#allocation10 + $0x10] sm:$0xff] (%p271_p13)   ;;  %s764_s28 = scalar_lea.sflag (%p271_p13), [#allocation7], %s1507_s12 }
  0x78   : >> { %v318_v8 = vmax.f32 %v310_v6, %v317_v7  ;;  %v325_v9 = vld [vmem:[%s324_s21] sm:$0x1]  ;;  %1008 = vmatpush3.bf16.msra.mxu1 (%p271_p13), %v1138_v14  ;;  %977 = vmatprep.subr.bf16.mxu0 (%p271_p13), %v1139_v15  ;;  %v1146_v22 = vld [vmem:[#allocation8 + $0x18] sm:$0xff] (%p271_p13)   ;;  %v1148_v27 = vld [vmem:[#allocation8 + $0x10] sm:$0xff] (%p271_p13)   ;;  %s1349_s26 = smov (%p271_p13), [#allocation11]  }
  0x79   : > { %1009 = vmatprep.subr.bf16.mxu1 (%p271_p13), %v1140_v16  ;;  %v1143_v19 = vld [vmem:[#allocation10 + $0x20] sm:$0xff] (%p271_p13)   ;;  %v339_v29 = vld [vmem:[%s1511_s22 + $0x8] sm:$0xff] (%p271_p13)  ;;  %v340_v37 = vld [vmem:[%s1511_s22 + $0x10] sm:$0xff] (%p271_p13)  ;;  %s1249_s15 = sshll.u32 (%p271_p13), %s1349_s26, 4  ;;  %s1250_s15 = int_to_ptr.vmem [resolvable:$false] %s1249_s15 }
  0x7a   : >> { %v326_v10 = vmax.f32 %v318_v8, %v325_v9  ;;  %v1144_v20 = vld [vmem:[#allocation8 + $0x20] sm:$0xff] (%p271_p13)   ;;  %v1149_v31 = vld [vmem:[#allocation10 + $0x8] sm:$0xff] (%p271_p13)   ;;  %v341_v38 = vld [vmem:[%s1511_s22 + $0x18] sm:$0xff] (%p271_p13)  ;;  %s1251_s6 = scalar_lea.vmem (%p271_p13), %s1250_s15, 4096  ;;  %p1252_p4 = scmp.lt.s32.totalorder (%p271_p13), %s1627_s18, %s1250_s15 }
  0x7b   : > { %978 = vmatpush3.bf16.msra.mxu0 (%p271_p13), %v1139_v15  ;;  %v338_v26 = vld [vmem:[%s1511_s22] sm:$0xff] (%p271_p13)  ;;  %v1150_v32 = vld [vmem:[#allocation8 + $0x8] sm:$0xff] (%p271_p13)   ;;  %v355_v44 = vpack.c.bf16 (%p271_p13), %v341_v38, %v340_v37  ;;  %v344_v49 = vld [vmem:[%s1511_s22 + $0x30] sm:$0xff] (%p271_p13) }
  0x7c   : >> { %s332_s3 = scalar_lea.vmem %s1511_s22, %s331_s0 [#allocation5]  ;;  %273 = sbr.rel (!%p271_p13) target bundleno = 96 (0x60), region = 105  ;;  %1010 = vmatpush3.bf16.msra.mxu1 (%p271_p13), %v1140_v16  ;;  %979 = vmatprep.subr.bf16.mxu0 (%p271_p13), %v1141_v17  ;;  %v354_v30 = vpack.c.bf16 (%p271_p13), %v339_v29, %v338_v26  ;;  %v1151_v33 = vld [vmem:[#allocation10] sm:$0xff] (%p271_p13)   ;;  %v343_v42 = vld [vmem:[%s1511_s22 + $0x28] sm:$0xff] (%p271_p13)  ;;  %v345_v50 = vld [vmem:[%s1511_s22 + $0x38] sm:$0xff] (%p271_p13) }
  0x7d   : >> { %v333_v11 = vld [vmem:[%s332_s3] sm:$0x1]  ;;  %1011 = vmatprep.subr.bf16.mxu1 (%p271_p13), %v1142_v18  ;;  %v347_v54 = vld [vmem:[%s1511_s22 + $0x48] sm:$0xff] (%p271_p13)  ;;  %v357_v56 = vpack.c.bf16 (%p271_p13), %v345_v50, %v344_v49  ;;  %v348_v61 = vld [vmem:[%s1511_s22 + $0x50] sm:$0xff] (%p271_p13) }
  0x7e   : >> { %v334_v12 = vmax.f32 %v326_v10, %v333_v11  ;;  %1023 = vmatprep.mubr.bf16.mxu1 (%p271_p13), %v354_v30  ;;  %v1152_v34 = vld [vmem:[#allocation8] sm:$0xff] (%p271_p13)   ;;  %v349_v62 = vld [vmem:[%s1511_s22 + $0x58] sm:$0xff] (%p271_p13)  ;;  %v351_v2 = vld [vmem:[%s1511_s22 + $0x68] sm:$0xff] (%p271_p13) }
  0x7f   : > { %980 = vmatpush3.bf16.msra.mxu0 (%p271_p13), %v1141_v17  ;;  %v342_v41 = vld [vmem:[%s1511_s22 + $0x20] sm:$0xff] (%p271_p13)  ;;  %v359_v4 = vpack.c.bf16 (%p271_p13), %v349_v62, %v348_v61  ;;  %v352_v9 = vld [vmem:[%s1511_s22 + $0x70] sm:$0xff] (%p271_p13)  ;;  %v353_v10 = vld [vmem:[%s1511_s22 + $0x78] sm:$0xff] (%p271_p13) }
  0x80   : >> { %336 = vst [vmem:[%s335_s14] sm:$0x1] %v334_v12  ;;  %1012 = vmatpush3.bf16.msra.mxu1 (%p271_p13), %v1142_v18  ;;  %981 = vmatprep.subr.bf16.mxu0 (%p271_p13), %v1143_v19  ;;  %v356_v46 = vpack.c.bf16 (%p271_p13), %v343_v42, %v342_v41  ;;  %v346_v53 = vld [vmem:[%s1511_s22 + $0x40] sm:$0xff] (%p271_p13)  ;;  %v361_v12 = vpack.c.bf16 (%p271_p13), %v353_v10, %v352_v9 }
  0x81   : > { %1013 = vmatprep.subr.bf16.mxu1 %v1144_v20  ;;  %v358_v58 = vpack.c.bf16 %v347_v54, %v346_v53  ;;  %v350_v1 = vld [vmem:[%s1511_s22 + $0x60] sm:$0xff]  ;;  %s942_s22 = sshll.u32 %s1327_s25, 11  ;;  %s1245_s25 = scalar_lea.vmem %s1627_s18, 2048 }
  0x82   : > { %v360_v6 = vpack.c.bf16 %v351_v2, %v350_v1  ;;  %v1588_v15 = vld [vmem:[%s1681_s4] ss:$0 sm:$0xff]  ;;  %s1625_s20 = scalar_lea.hbm %s1682_s5, %s942_s22  ;;  %p1246_p0 = scmp.ne.s32.totalorder %s1627_s18, %s1245_s25 }
  0x83   : > { %982 = vmatpush3.bf16.msra.mxu0 %v1143_v19  ;;  %p1253_p5 = scmp.lt.s32.totalorder %s1251_s6, %s1245_s25 }
  0x84   : > { %1014 = vmatpush3.bf16.msra.mxu1 %v1144_v20  ;;  %983 = vmatprep.subr.bf16.mxu0 %v1145_v21  ;;  %p1247_p2 = pnand %p1246_p0, %p1480_p12 }
  0x85   : > { %1015 = vmatprep.subr.bf16.mxu1 %v1146_v22  ;;  %p1254_p10 = por %p1253_p5, %p1252_p4 }
  0x86   : > { %p1248_p7 = pneg %p1247_p2 }
  0x87   : > { %v362_v24 = vld [vmem:[#allocation2] sm:$0xff]  ;;  %v363_v25 = vld [vmem:[#allocation2 + $0x8] sm:$0xff]  ;;  %984 = vmatpush3.bf16.msra.mxu0 %v1145_v21  ;;  %v364_v35 = vld [vmem:[#allocation2 + $0x10] sm:$0xff] }
  0x88   : > { %v378_v28 = vpack.c.bf16 %v363_v25, %v362_v24  ;;  %1016 = vmatpush3.bf16.msra.mxu1 %v1146_v22  ;;  %985 = vmatprep.subr.bf16.mxu0 %v1147_v23  ;;  %v365_v36 = vld [vmem:[#allocation2 + $0x18] sm:$0xff]  ;;  %v366_v39 = vld [vmem:[#allocation2 + $0x20] sm:$0xff]  ;;  %v367_v40 = vld [vmem:[#allocation2 + $0x28] sm:$0xff]  ;;  %p1255_p1 = pnand %p1254_p10, %p1248_p7 }
  0x89   : > { %1017 = vmatprep.subr.bf16.mxu1 %v1148_v27  ;;  %v379_v43 = vpack.c.bf16 %v365_v36, %v364_v35  ;;  %v380_v45 = vpack.c.bf16 %v367_v40, %v366_v39  ;;  %v368_v47 = vld [vmem:[#allocation2 + $0x30] sm:$0xff]  ;;  %v369_v48 = vld [vmem:[#allocation2 + $0x38] sm:$0xff]  ;;  %v370_v51 = vld [vmem:[#allocation2 + $0x40] sm:$0xff] }
  0x8a   : > { %991 = vmatprep.mubr.bf16.mxu0 %v378_v28  ;;  %v371_v52 = vld [vmem:[#allocation2 + $0x48] sm:$0xff]  ;;  %v381_v55 = vpack.c.bf16 %v369_v48, %v368_v47  ;;  %v372_v59 = vld [vmem:[#allocation2 + $0x50] sm:$0xff]  ;;  %v373_v60 = vld [vmem:[#allocation2 + $0x58] sm:$0xff] }
  0x8b   : > { %986 = vmatpush3.bf16.msra.mxu0 %v1147_v23  ;;  %v382_v57 = vpack.c.bf16 %v371_v52, %v370_v51  ;;  %v374_v63 = vld [vmem:[#allocation2 + $0x60] sm:$0xff]  ;;  %v375_v0 = vld [vmem:[#allocation2 + $0x68] sm:$0xff]  ;;  %v383_v3 = vpack.c.bf16 %v373_v60, %v372_v59  ;;  %v376_v7 = vld [vmem:[#allocation2 + $0x70] sm:$0xff] }
  0x8c   : > { %1018 = vmatpush3.bf16.msra.mxu1 %v1148_v27  ;;  %987 = vmatprep.subr.bf16.mxu0 %v1149_v31  ;;  %v384_v5 = vpack.c.bf16 %v375_v0, %v374_v63  ;;  %v377_v8 = vld [vmem:[#allocation2 + $0x78] sm:$0xff] }
  0x8d   : > { %1019 = vmatprep.subr.bf16.mxu1 %v1150_v32  ;;  %v385_v11 = vpack.c.bf16 %v377_v8, %v376_v7 }
  0x8f   : > { %988 = vmatpush3.bf16.msra.mxu0 %v1149_v31 }
  0x90   : > { %1020 = vmatpush3.bf16.msra.mxu1 %v1150_v32  ;;  %989 = vmatprep.subr.bf16.mxu0 %v1151_v33 }
  0x91   : > { %1021 = vmatprep.subr.bf16.mxu1 %v1152_v34 }
  0x93   : > { %990 = vmatpush3.bf16.msra.mxu0 %v1151_v33 }
  0x94   : > { %1022 = vmatpush3.bf16.msra.mxu1 %v1152_v34 }
  0x96   : > { %992 = vmatmul.mubr.bf16.vlgmr.msra.gmra.mxu0 %v379_v43 }
  0x97   : > { %1024 = vmatmul.mubr.bf16.vlgmr.msra.gmra.mxu1 %v355_v44  ;;  %995 = vmatprep.mubr.bf16.mxu0 %v380_v45 }
  0x98   : > { %1027 = vmatprep.mubr.bf16.mxu1 %v356_v46 }
  0x9e   : > { %996 = vmatmul.mubr.bf16.gmra.mxu0 %v381_v55 }
  0x9f   : > { %1028 = vmatmul.mubr.bf16.gmra.mxu1 %v357_v56  ;;  %999 = vmatprep.mubr.bf16.mxu0 %v382_v57 }
  0xa0   : > { %1031 = vmatprep.mubr.bf16.mxu1 %v358_v58 }
  0xa6   : > { %1000 = vmatmul.mubr.bf16.gmra.mxu0 %v383_v3 }
  0xa7   : > { %1032 = vmatmul.mubr.bf16.gmra.mxu1 %v359_v4  ;;  %1003 = vmatprep.mubr.bf16.mxu0 %v384_v5 }
  0xa8   : > { %1035 = vmatprep.mubr.bf16.mxu1 %v360_v6 }
  0xae   : > { %1004 = vmatmul.mubr.bf16.gmra.mxu0 %v385_v11 }
  0xaf   : > { %1036 = vmatmul.mubr.bf16.gmra.mxu1 %v361_v12 }
 0x156   : > { %v993_v13 = vpop.f32.mrf.mxu0 }
 0x157   : > { %v1025_v14 = vpop.f32.mrf.mxu1 }
 0x158   : > { %v654_v16 = vadd.f32 %v1025_v14, %v993_v13  ;;  %v500_v17 = vpop.f32.mrf.mxu0 }
 0x159   : > { %v645_v18 = vpop.f32.mrf.mxu1 }
 0x15a   : > { %v717_v19 = vadd.f32 %v1588_v15, %v654_v16  ;;  %v646_v20 = vadd.f32 %v645_v18, %v500_v17  ;;  %v994_v21 = vpop.f32.mrf.mxu0 }
 0x15b   : > { %v1026_v22 = vpop.f32.mrf.mxu1 }
 0x15c   : > { %v733_v23 = vmax.f32 %v717_v19, 0.0  ;;  %v715_v24 = vadd.f32 %v1588_v15, %v646_v20  ;;  %v657_v25 = vadd.f32 %v1026_v22, %v994_v21  ;;  %v503_v26 = vpop.f32.mrf.mxu0 }
 0x15d   : > { %v648_v27 = vpop.f32.mrf.mxu1 }
 0x15e   : > { %749 = vst [vmem:[%s1521_s9 + $0x10] sm:$0xff] %v733_v23  ;;  %v731_v28 = vmax.f32 %v715_v24, 0.0  ;;  %v718_v29 = vadd.f32 %v1588_v15, %v657_v25  ;;  %v649_v30 = vadd.f32 %v648_v27, %v503_v26  ;;  %v997_v31 = vpop.f32.mrf.mxu0 }
 0x15f   : > { %v1029_v32 = vpop.f32.mrf.mxu1 }
 0x160   : > { %747 = vst [vmem:[%s1521_s9] sm:$0xff] %v731_v28  ;;  %v734_v33 = vmax.f32 %v718_v29, 0.0  ;;  %v716_v34 = vadd.f32 %v1588_v15, %v649_v30  ;;  %v670_v35 = vadd.f32 %v1029_v32, %v997_v31  ;;  %v516_v36 = vpop.f32.mrf.mxu0 }
 0x161   : > { %v661_v37 = vpop.f32.mrf.mxu1 }
 0x162   : > { %750 = vst [vmem:[%s1521_s9 + $0x18] sm:$0xff] %v734_v33  ;;  %v732_v38 = vmax.f32 %v716_v34, 0.0  ;;  %v721_v39 = vadd.f32 %v1588_v15, %v670_v35  ;;  %v662_v40 = vadd.f32 %v661_v37, %v516_v36  ;;  %v998_v41 = vpop.f32.mrf.mxu0 }
 0x163   : > { %v1030_v42 = vpop.f32.mrf.mxu1 }
 0x164   : > { %748 = vst [vmem:[%s1521_s9 + $0x8] sm:$0xff] %v732_v38  ;;  %v737_v43 = vmax.f32 %v721_v39, 0.0  ;;  %v719_v44 = vadd.f32 %v1588_v15, %v662_v40  ;;  %v673_v45 = vadd.f32 %v1030_v42, %v998_v41  ;;  %v519_v46 = vpop.f32.mrf.mxu0 }
 0x165   : > { %v664_v47 = vpop.f32.mrf.mxu1 }
 0x166   : > { %753 = vst [vmem:[%s1521_s9 + $0x30] sm:$0xff] %v737_v43  ;;  %v735_v48 = vmax.f32 %v719_v44, 0.0  ;;  %v722_v49 = vadd.f32 %v1588_v15, %v673_v45  ;;  %v665_v50 = vadd.f32 %v664_v47, %v519_v46  ;;  %v1001_v51 = vpop.f32.mrf.mxu0 }
 0x167   : > { %v1033_v52 = vpop.f32.mrf.mxu1 }
 0x168   : > { %751 = vst [vmem:[%s1521_s9 + $0x20] sm:$0xff] %v735_v48  ;;  %v738_v53 = vmax.f32 %v722_v49, 0.0  ;;  %v720_v54 = vadd.f32 %v1588_v15, %v665_v50  ;;  %v686_v55 = vadd.f32 %v1033_v52, %v1001_v51  ;;  %v532_v56 = vpop.f32.mrf.mxu0 }
 0x169   : > { %v677_v57 = vpop.f32.mrf.mxu1 }
 0x16a   : > { %754 = vst [vmem:[%s1521_s9 + $0x38] sm:$0xff] %v738_v53  ;;  %v736_v58 = vmax.f32 %v720_v54, 0.0  ;;  %v725_v59 = vadd.f32 %v1588_v15, %v686_v55  ;;  %v678_v60 = vadd.f32 %v677_v57, %v532_v56  ;;  %v1002_v61 = vpop.f32.mrf.mxu0 }
 0x16b   : > { %v1034_v62 = vpop.f32.mrf.mxu1 }
 0x16c   : > { %752 = vst [vmem:[%s1521_s9 + $0x28] sm:$0xff] %v736_v58  ;;  %v741_v63 = vmax.f32 %v725_v59, 0.0  ;;  %v723_v0 = vadd.f32 %v1588_v15, %v678_v60  ;;  %v689_v1 = vadd.f32 %v1034_v62, %v1002_v61  ;;  %v535_v2 = vpop.f32.mrf.mxu0 }
 0x16d   : > { %v680_v3 = vpop.f32.mrf.mxu1 }
 0x16e   : > { %757 = vst [vmem:[%s1521_s9 + $0x50] sm:$0xff] %v741_v63  ;;  %v739_v4 = vmax.f32 %v723_v0, 0.0  ;;  %v726_v5 = vadd.f32 %v1588_v15, %v689_v1  ;;  %v681_v6 = vadd.f32 %v680_v3, %v535_v2  ;;  %v1005_v7 = vpop.f32.mrf.mxu0 }
 0x16f   : > { %v1037_v8 = vpop.f32.mrf.mxu1 }
 0x170   : > { %755 = vst [vmem:[%s1521_s9 + $0x40] sm:$0xff] %v739_v4  ;;  %v742_v9 = vmax.f32 %v726_v5, 0.0  ;;  %v724_v10 = vadd.f32 %v1588_v15, %v681_v6  ;;  %v702_v11 = vadd.f32 %v1037_v8, %v1005_v7  ;;  %v548_v12 = vpop.f32.mrf.mxu0 }
 0x171   : > { %v693_v13 = vpop.f32.mrf.mxu1 }
 0x172   : > { %758 = vst [vmem:[%s1521_s9 + $0x58] sm:$0xff] %v742_v9  ;;  %v740_v14 = vmax.f32 %v724_v10, 0.0  ;;  %v729_v16 = vadd.f32 %v1588_v15, %v702_v11  ;;  %v694_v17 = vadd.f32 %v693_v13, %v548_v12  ;;  %v1006_v18 = vpop.f32.mrf.mxu0 }
 0x173   : > { %v1038_v19 = vpop.f32.mrf.mxu1 }
 0x174   : > { %756 = vst [vmem:[%s1521_s9 + $0x48] sm:$0xff] %v740_v14  ;;  %v745_v20 = vmax.f32 %v729_v16, 0.0  ;;  %v727_v21 = vadd.f32 %v1588_v15, %v694_v17  ;;  %v705_v22 = vadd.f32 %v1038_v19, %v1006_v18  ;;  %v551_v23 = vpop.f32.mrf.mxu0 }
 0x175   : > { %v696_v24 = vpop.f32.mrf.mxu1 }
 0x176   : > { %761 = vst [vmem:[%s1521_s9 + $0x70] sm:$0xff] %v745_v20  ;;  %v743_v25 = vmax.f32 %v727_v21, 0.0  ;;  %v730_v26 = vadd.f32 %v1588_v15, %v705_v22  ;;  %v697_v27 = vadd.f32 %v696_v24, %v551_v23 }
 0x178   : > { %759 = vst [vmem:[%s1521_s9 + $0x60] sm:$0xff] %v743_v25  ;;  %v746_v28 = vmax.f32 %v730_v26, 0.0  ;;  %v728_v29 = vadd.f32 %v1588_v15, %v697_v27 }
 0x17a   : > { %762 = vst [vmem:[%s1521_s9 + $0x78] sm:$0xff] %v746_v28  ;;  %v744_v30 = vmax.f32 %v728_v29, 0.0 }
 0x17c   : > { %760 = vst [vmem:[%s1521_s9 + $0x68] sm:$0xff] %v744_v30 }
 0x17d   : > { %1258 = shalt.err (!%p1255_p1)
}
 0x17e   : > { %s1259_s9 = scalar_lea.hbm %s1625_s20, 2048  ;;  %s1263_s11 = scalar_lea.hbm %s1682_s5, 4096 }
 0x17f   : > { %p1260_p6 = scmp.ne.s32.totalorder %s1625_s20, %s1259_s9  ;;  %p1264_p3 = scmp.lt.s32.totalorder %s1625_s20, %s1682_s5 }
 0x180   : > { %p1265_p8 = scmp.lt.s32.totalorder %s1263_s11, %s1259_s9 }
 0x181   : > { %p1261_p9 = pnand %p1260_p6, %p1480_p12 }
 0x182   : > { %p1266_p13 = por %p1265_p8, %p1264_p3 }
 0x183   : > { %p1262_p11 = pneg %p1261_p9 }
 0x185   : > { %p1267_p0 = pnand %p1266_p13, %p1262_p11 }
 0x187   : > { %1270 = shalt.err (!%p1267_p0)
}
 0x188   : > { %s1350_s17 = smov 128   ;;  %s1351_s1 = smov 8  }
 0x189   : > { %1049 = dma.vmem_to_hbm [thread:$0]  (%p1480_p12), %s1627_s18, 2048, %s1625_s20, %s764_s28, %s1350_s17, %s1350_s17, %s1351_s1  }
 0x18a PF: > { %s794_s2 = sand.u32 1, %s1315_s23   ;;  %p1711_p2 = scmp.ne.s32.totalorder %s1699_s8, 0 }
 0x18b   : > { %p1712_p7 = scmp.ge.s32.totalorder %s1335_s27, 2  ;;  %s795_s21 = scalar_lea.sflag [#allocation7], %s794_s2 }
 0x18d   : > { %p1063_p4 = pnand %p1712_p7, %p1711_p2 }
 0x18f   : > { %p1064_p5 = pneg %p1063_p4 }
 0x191   : > { %1310 = dma.done.wait (%p1064_p5), %s795_s21, 2048  }
 0x192   : > { %1312 = vsyncadd (%p1064_p5), %s795_s21, 4294965248  ;;  %s28_s27 = sadd.s32 1, %s1335_s27   ;;  %s1713_s23 = sld [smem:[#allocation16_spill]] }
 0x193   : > { %p25_p10 = scmp.ge.s32.totalorder %s28_s27, 4   ;;  %s1714_s0 = sld [smem:[#allocation17_spill]] }
 0x194   : > { %s1715_s24 = sld [smem:[#allocation20_spill]] }
 0x195   : > { %s1716_s25 = sld [smem:[#allocation18_spill]]  ;;  %27 = sbr.rel (!%p25_p10) target bundleno = 23 (0x17), region = 116 }
 0x196   : > { %s1717_s26 = sld [smem:[#allocation19_spill]] }
 0x19a   :  { %800 = vsyncpa [#allocation6], 1 }
 0x19b   :  { %802 = vsyncpa [#allocation6 + $0x1], 1 }
 0x19c   :  { %803 = vsyncpa [#allocation9], 1 }
 0x19d   :  { %804 = vsyncpa [#allocation7], 1 }
 0x19e   :  { %806 = vsyncpa [#allocation7 + $0x1], 1 }

</bundles_post_ra>
